<compile_context>
chip_gen: v6e
topology: v6e:2x2x1
jax: 0.10.0
libtpu: 0.0.40
codegen_flags: <defaults>
</compile_context>

<pallas_src>
import jax
import jax.numpy as jnp
from jax.experimental import pallas as pl
from jax.experimental.pallas import tpu as pltpu

N_STATES = 4       # CartPole-v0 observation dim
N_ACTIONS = 2      # CartPole-v0 action dim
HIDDEN = 120

LANE = 128         # padded hidden width / param-slab width
K_PAD = 16         # padded input-feature width (bf16 sublane tile)
OUT_PAD = 8        # padded action width for the narrow output store
ONE_COL = N_STATES # x column that carries the constant 1 (folds fc1 bias in)
ONE_HID = LANE - 1 # hidden column that carries the constant 1 (folds out bias in)

# Packed bf16 parameter slab [PARAM_ROWS, 128]; region offsets are multiples of
# 16 so all in-kernel row slices are bf16-sublane aligned.
W1_OFF = 0                   # rows [ 0, 16): w1^T; row ONE_COL holds b1 and the ones hook
W2_OFF = W1_OFF + K_PAD      # rows [16,144): w2^T; row ONE_HID holds b2
PARAM_ROWS = W2_OFF + LANE   # 144


def _net_kernel(x_ref, p_ref, o_ref):
    # x_ref: [TB, 16] bf16 (features in cols 0..3, constant 1 in col 4, zeros elsewhere)
    # p_ref: [144, 128] bf16 packed parameter slab
    # o_ref: [TB, 8] f32   (cols >= N_ACTIONS are zero)
    x = x_ref[...]
    w1 = p_ref[W1_OFF:W1_OFF + K_PAD, :]      # (16, 128) bf16
    w2 = p_ref[W2_OFF:W2_OFF + LANE, :]       # (128, 128) bf16

    # fc1 (+bias via the ones column) with f32 MXU accumulation, ReLU in f32.
    h = jnp.dot(x, w1, preferred_element_type=jnp.float32)      # (TB, 128) f32
    h = jnp.maximum(h, 0.0)                    # ReLU; ones column stays 1.0
    # out layer (+bias via hidden column ONE_HID).
    q = jnp.dot(h.astype(jnp.bfloat16), w2,
                preferred_element_type=jnp.float32)              # (TB, 128) f32
    o_ref[...] = q[:, :OUT_PAD].astype(o_ref.dtype)              # narrow store


def prepare_params(w1, b1, w2, b2):
    """One-time layout prep: PyTorch (out, in) weights -> packed padded bf16 slab.

    w1: [HIDDEN, N_STATES], b1: [HIDDEN], w2: [N_ACTIONS, HIDDEN], b2: [N_ACTIONS].
    Biases are folded into the weight slab via the constant-1 column trick; all
    padding is zero so padded lanes/rows never leak into valid outputs.
    """
    slab = jnp.zeros((PARAM_ROWS, LANE), jnp.float32)
    # fc1: w1^T in rows [0, 4); b1 + ones-propagation hook in row ONE_COL.
    slab = slab.at[W1_OFF:W1_OFF + N_STATES, :HIDDEN].set(w1.T.astype(jnp.float32))
    slab = slab.at[W1_OFF + ONE_COL, :HIDDEN].set(b1.astype(jnp.float32))
    slab = slab.at[W1_OFF + ONE_COL, ONE_HID].set(1.0)
    # out: w2^T in rows [W2_OFF, W2_OFF + HIDDEN); b2 in the ones-hidden row.
    slab = slab.at[W2_OFF:W2_OFF + HIDDEN, :N_ACTIONS].set(w2.T.astype(jnp.float32))
    slab = slab.at[W2_OFF + ONE_HID, :N_ACTIONS].set(b2.astype(jnp.float32))
    return slab.astype(jnp.bfloat16)


def _round_up(n, m):
    return -(-n // m) * m


def _choose_tiles(batch):
    """Pick (total padded rows, batch tile, grid) for a given batch size."""
    bp = _round_up(max(batch, 1), 16)            # bf16 sublane alignment
    if bp >= 32:
        # >= 2 tiles so the "parallel" batch axis engages both v7x TensorCores;
        # cap tiles at ~1024 rows to amortize per-grid-step overhead.  VMEM is
        # not a constraint at these sizes on v5e/v6e/v7x.
        num_tiles = max(2, pl.cdiv(bp, 1024))
    else:
        num_tiles = 1
    tb = _round_up(pl.cdiv(bp, num_tiles), 16)
    grid = pl.cdiv(bp, tb)                       # no full-extra-tile rounding
    return grid * tb, tb, grid


def net_forward(x, params):
    """Forward pass. x: [B, N_STATES]; params: packed bf16 slab from prepare_params."""
    B = x.shape[0]
    bp_total, tb, grid = _choose_tiles(B)

    # Minimal per-call layout prep (tiny: bp_total x 16 bf16).  Callers that can
    # pre-stage x in this padded bf16 layout skip this XLA op entirely.
    x_pad = jnp.zeros((bp_total, K_PAD), jnp.bfloat16)
    x_pad = x_pad.at[:B, :N_STATES].set(x.astype(jnp.bfloat16))
    x_pad = x_pad.at[:B, ONE_COL].set(jnp.bfloat16(1.0))   # bias-carrying column

    out_pad = pl.pallas_call(
        _net_kernel,
        out_shape=jax.ShapeDtypeStruct((bp_total, OUT_PAD), jnp.float32),
        grid_spec=pltpu.PrefetchScalarGridSpec(
            num_scalar_prefetch=0,
            grid=(grid,),
            in_specs=[
                pl.BlockSpec((tb, K_PAD), lambda i: (i, 0)),
                # Constant index_map: the slab stays resident in VMEM and is
                # not re-fetched across batch tiles.
                pl.BlockSpec((PARAM_ROWS, LANE), lambda i: (0, 0)),
            ],
            out_specs=pl.BlockSpec((tb, OUT_PAD), lambda i: (i, 0)),
        ),
        compiler_params=pltpu.CompilerParams(
            dimension_semantics=("parallel",)),   # shards batch tiles on v7x 2-TC
    )(x_pad, params)

    # Padded batch rows are exactly zero (no ones column there); slice them off.
    # TODO(synk): fuse the downstream consumer (argmax for action selection or
    # the Q(s,a) gather for the TD loss) into the kernel to avoid this slice.
    return out_pad[:B, :N_ACTIONS]


def init_params(key):
    """Deterministic synthetic init matching the PyTorch module's shapes.

    fc1.weight ~ N(0, 0.1), out.weight ~ N(0, 0.1) (as in __init__);
    biases use PyTorch's default uniform(-1/sqrt(fan_in), 1/sqrt(fan_in)).
    """
    k1, k2, k3, k4 = jax.random.split(key, 4)
    w1 = 0.1 * jax.random.normal(k1, (HIDDEN, N_STATES), jnp.float32)
    b1 = jax.random.uniform(
        k2, (HIDDEN,), jnp.float32,
        minval=-1.0 / jnp.sqrt(N_STATES), maxval=1.0 / jnp.sqrt(N_STATES))
    w2 = 0.1 * jax.random.normal(k3, (N_ACTIONS, HIDDEN), jnp.float32)
    b2 = jax.random.uniform(
        k4, (N_ACTIONS,), jnp.float32,
        minval=-1.0 / jnp.sqrt(HIDDEN), maxval=1.0 / jnp.sqrt(HIDDEN))
    return w1, b1, w2, b2


if __name__ == "__main__":
    key = jax.random.PRNGKey(0)
    kx, kp = jax.random.split(key)

    w1, b1, w2, b2 = init_params(kp)
    # One-time parameter layout prep (reused across calls).
    params = jax.block_until_ready(prepare_params(w1, b1, w2, b2))

    fwd = jax.jit(net_forward)

    # Small batch (action-selection path).
    B = 2
    x = jax.random.normal(kx, (B, N_STATES), jnp.float32)
    actions_value = jax.block_until_ready(fwd(x, params))
    ref = jnp.maximum(x @ w1.T + b1, 0.0) @ w2.T + b2
    assert actions_value.shape == (B, N_ACTIONS)
    # bf16 matmul inputs with f32 accumulation -> loose tolerance vs f32 ref.
    assert jnp.allclose(actions_value, ref, atol=5e-2, rtol=5e-2)

    # Larger batch (replay-buffer path: exercises the >=2-tile grid).
    B2_ = 300
    x2 = jax.random.normal(jax.random.PRNGKey(1), (B2_, N_STATES), jnp.float32)
    av2 = jax.block_until_ready(fwd(x2, params))
    ref2 = jnp.maximum(x2 @ w1.T + b1, 0.0) @ w2.T + b2
    assert av2.shape == (B2_, N_ACTIONS)
    assert jnp.allclose(av2, ref2, atol=5e-2, rtol=5e-2)

    print("KERNEL_OK")
</pallas_src>

<mosaic_0001>
module attributes {stable_mosaic.version = 11 : i64} {
  func.func @_net_kernel(%arg0: i32, %arg1: memref<16x16xbf16, #tpu.memory_space<vmem>>, %arg2: memref<144x128xbf16, #tpu.memory_space<vmem>>, %arg3: memref<16x8xf32, #tpu.memory_space<vmem>>) attributes {dimension_semantics = [#tpu.dimension_semantics<parallel>], iteration_bounds = array<i64: 1>, scalar_prefetch = 0 : i64, scratch_operands = 0 : i64, tpu.core_type = #tpu.core_type<tc>, window_params = [{transform_indices = @transform_0, window_bounds = array<i64: 16, 16>}, {pipeline_mode = #tpu.pipeline_mode<synchronous>, transform_indices = @transform_1, window_bounds = array<i64: 144, 128>}, {transform_indices = @transform_2, window_bounds = array<i64: 16, 8>}]} {
    %c0 = arith.constant 0 : index
    %c0_0 = arith.constant 0 : index
    %0 = vector.load %arg1[%c0, %c0_0] : memref<16x16xbf16, #tpu.memory_space<vmem>>, vector<16x16xbf16>
    %c0_1 = arith.constant 0 : index
    %c0_2 = arith.constant 0 : index
    %1 = vector.load %arg2[%c0_1, %c0_2] : memref<144x128xbf16, #tpu.memory_space<vmem>>, vector<16x128xbf16>
    %c16 = arith.constant 16 : index
    %c0_3 = arith.constant 0 : index
    %2 = vector.load %arg2[%c16, %c0_3] : memref<144x128xbf16, #tpu.memory_space<vmem>>, vector<128x128xbf16>
    %cst = arith.constant dense<0.000000e+00> : vector<16x128xf32>
    %3 = tpu.matmul %0, %1, %cst {dimension_numbers = #tpu.dot_dimension_numbers<[1], [0], [0], [1], [0, 0, 1, 1], [], []>} : vector<16x16xbf16>, vector<16x128xbf16>, vector<16x128xf32> -> vector<16x128xf32>
    %cst_4 = arith.constant 0.000000e+00 : f32
    %4 = vector.broadcast %cst_4 : f32 to vector<16x128xf32>
    %5 = arith.maximumf %3, %4 : vector<16x128xf32>
    %6 = arith.truncf %5 : vector<16x128xf32> to vector<16x128xbf16>
    %cst_5 = arith.constant dense<0.000000e+00> : vector<16x128xf32>
    %7 = tpu.matmul %6, %2, %cst_5 {dimension_numbers = #tpu.dot_dimension_numbers<[1], [0], [0], [1], [0, 0, 1, 1], [], []>} : vector<16x128xbf16>, vector<128x128xbf16>, vector<16x128xf32> -> vector<16x128xf32>
    %8 = vector.extract_strided_slice %7 {offsets = [0, 0], sizes = [16, 8], strides = [1, 1]} : vector<16x128xf32> to vector<16x8xf32>
    %c0_6 = arith.constant 0 : index
    %c0_7 = arith.constant 0 : index
    %9 = vector.load %arg3[%c0_6, %c0_7] : memref<16x8xf32, #tpu.memory_space<vmem>>, vector<16x8xf32>
    tpu.vector_store %arg3[%c0_6, %c0_7], %8 {strides = array<i32>} : memref<16x8xf32, #tpu.memory_space<vmem>>, vector<16x8xf32>,
    return
  }
  func.func @transform_0(%arg0: i32) -> (i32, i32) {
    %c0_i32 = arith.constant 0 : i32
    %c0_i32_0 = arith.constant 0 : i32
    return %arg0, %c0_i32 : i32, i32
  }
  func.func @transform_1(%arg0: i32) -> (i32, i32) {
    %c0_i32 = arith.constant 0 : i32
    %c0_i32_0 = arith.constant 0 : i32
    %c0_i32_1 = arith.constant 0 : i32
    return %c0_i32, %c0_i32_0 : i32, i32
  }
  func.func @transform_2(%arg0: i32) -> (i32, i32) {
    %c0_i32 = arith.constant 0 : i32
    %c0_i32_0 = arith.constant 0 : i32
    return %arg0, %c0_i32 : i32, i32
  }
}

</mosaic_0001>

<bundles_post_ra>
// kernel: net_forward.1
= control target key start
LH: loop header
LB: loop body
LE: loop exit
PB: predicated region body
PF: predicated region fallthrough
CT: control target
= control target key end

     0   :  { %7 = vsyncpa [#allocation3], 0  ;;  %s287_s9 = smov [#allocation2]   ;;  %s319_s0 = inlined_call_operand.vmem [shape: bf16[16,16], index: 0, kind: input, shape index: {}]   ;;  %s320_s1 = inlined_call_operand.hbm [shape: bf16[144,128], index: 1, kind: input, shape index: {}]   ;;  %s321_s2 = inlined_call_operand.vmem [shape: f32[16,8], index: 2, kind: output, shape index: {}]  }
   0x1   :  { %s15_s10 = sshll.u32 %s287_s9, 4  ;;  %s16_s10 = int_to_ptr.vmem [resolvable:$true] %s15_s10 }
   0x2   :  { %s273_s11 = scalar_lea.vmem %s16_s10, 1152  ;;  %p278_p1 = scmp.lt.s32.totalorder %s16_s10, %s16_s10 }
   0x3   :  { %p274_p0 = scmp.ne.s32.totalorder %s16_s10, %s273_s11  ;;  %p279_p2 = scmp.lt.s32.totalorder %s273_s11, %s273_s11 }
   0x5   :  { %p280_p3 = por %p279_p2, %p278_p1 }
   0x7   :  { %p281_p4 = pnand %p280_p3, %p274_p0 }
   0x9   :  { %284 = shalt.err (!%p281_p4)
}
   0xa   :  { %s288_s12 = smov 64   ;;  %s289_s13 = smov 4  }
   0xb   :  { %21 = dma.hbm_to_vmem [thread:$0]  %s320_s1, 1152, %s16_s10, [#allocation3], %s288_s12, %s288_s12, %s289_s13  }
   0xc   :  { %285 = dma.done.wait [#allocation3], 1152  }
   0xd   :  { %286 = vsyncadd [#allocation3], 4294966144  ;;  %v290_v0 = vmov 0.0   ;;  %vm291_vm0 = vmmov 0   ;;  %v255_v1 = vld [vmem:[#allocation2] sm:$0xff]   ;;  %vm57_vm1 = vcmask 130048  }
   0xe   :  { %224 = vmatprep.subr.bf16.mxu0 %v290_v0  ;;  %226 = vmatprep.mubr.msk.bf16.mxu0 %vm291_vm0, %v290_v0  ;;  %v256_v2 = vld [vmem:[%s319_s0] sm:$0xff]   ;;  %v258_v4 = vld [vmem:[#allocation2 + $0x38] sm:$0xff]   ;;  %v259_v5 = vld [vmem:[#allocation2 + $0x30] sm:$0xff]   ;;  %vm194_vm2 = vcmask 64512  }
   0xf   :  { %230 = vmatprep.subr.bf16.mxu1 %v290_v0  ;;  %246 = vmatprep.mubr.msk.bf16.mxu1 %vm291_vm0, %v290_v0  ;;  %v257_v3 = vld [vmem:[#allocation2 + $0x40] sm:$0xff]   ;;  %v260_v6 = vld [vmem:[#allocation2 + $0x28] sm:$0xff]   ;;  %v262_v8 = vld [vmem:[#allocation2 + $0x18] sm:$0xff]  }
  0x10   :  { %225 = vmatpush3.bf16.msra.mxu0 %v255_v1  ;;  %231 = vmatpush3.bf16.msra.mxu1 %v257_v3  ;;  %v261_v7 = vld [vmem:[#allocation2 + $0x20] sm:$0xff]   ;;  %v263_v9 = vld [vmem:[#allocation2 + $0x10] sm:$0xff]   ;;  %v264_v10 = vld [vmem:[#allocation2 + $0x8] sm:$0xff]  }
  0x11   :  { %232 = vmatprep.subr.bf16.mxu1 %v290_v0 }
  0x13   :  { %227 = vmatmul.mubr.msk.bf16.vlgmr.msra.gmra.mxu0 %vm57_vm1, %v256_v2 }
  0x14   :  { %233 = vmatpush3.bf16.msra.mxu1 %v258_v4 }
  0x15   :  { %234 = vmatprep.subr.bf16.mxu1 %v290_v0 }
  0x18   :  { %235 = vmatpush3.bf16.msra.mxu1 %v259_v5 }
  0x19   :  { %236 = vmatprep.subr.bf16.mxu1 %v290_v0 }
  0x1c   :  { %237 = vmatpush3.bf16.msra.mxu1 %v260_v6 }
  0x1d   :  { %238 = vmatprep.subr.bf16.mxu1 %v290_v0 }
  0x20   :  { %239 = vmatpush3.bf16.msra.mxu1 %v261_v7 }
  0x21   :  { %240 = vmatprep.subr.bf16.mxu1 %v290_v0 }
  0x24   :  { %241 = vmatpush3.bf16.msra.mxu1 %v262_v8 }
  0x25   :  { %242 = vmatprep.subr.bf16.mxu1 %v290_v0 }
  0x28   :  { %243 = vmatpush3.bf16.msra.mxu1 %v263_v9 }
  0x29   :  { %244 = vmatprep.subr.bf16.mxu1 %v290_v0 }
  0x2c   :  { %245 = vmatpush3.bf16.msra.mxu1 %v264_v10 }
  0xd3   :  { %v95_v11 = vpop.f32.mrf.mxu0 }
  0xd4   :  { %v102_v14 = vmax.f32 %v95_v11, 0.0 }
  0xd5   :  { %v228_v12 = vpop.f32.mrf.mxu0 }
  0xd7   :  { %v98_v13 = vpop.f32.mrf.mxu0 }
  0xd8   :  { %v103_v15 = vmax.f32 %v98_v13, 0.0 }
  0xd9   :  { %v229_v16 = vpop.f32.mrf.mxu0 }
  0xda   :  { %v104_v17 = vpack.c.bf16 %v103_v15, %v102_v14 }
  0xdc   :  { %247 = vmatmul.mubr.bf16.vlgmr.msra.gmra.mxu1 %v104_v17 }
 0x19c   :  { %v187_v18 = vpop.f32.mrf.mxu1 }
 0x19d   :  { %195 = vst.msk [vmem:[%s321_s2] sm:$0xff] %vm194_vm2, %v187_v18 }
 0x19e   :  { %v248_v19 = vpop.f32.mrf.mxu1 }
 0x1a0   :  { %v190_v20 = vpop.f32.mrf.mxu1 }
 0x1a1   :  { %196 = vst.msk [vmem:[%s321_s2 + $0x8] sm:$0xff] %vm194_vm2, %v190_v20 }
 0x1a2   :  { %v249_v21 = vpop.f32.mrf.mxu1 }
 0x1a3   :  { %201 = vsyncpa [#allocation3], 1 }

</bundles_post_ra>
